<compile_context>
chip_gen: v7x
topology: tpu7x:2x2x1
jax: 0.10.0
libtpu: 0.0.40
codegen_flags: <defaults>
</compile_context>

<pallas_src>
import jax
import jax.numpy as jnp
from jax import lax
from jax.experimental import pallas as pl
from jax.experimental.pallas import tpu as pltpu


# ---------------------------------------------------------------------------
# Pallas kernels
# ---------------------------------------------------------------------------
def _conv1_bn_relu_kernel(x0_ref, x1_ref, b_ref, shift_ref, o_ref):
    """Conv3d(1->C1,k=2,s=1,p=1) + folded BN + ReLU for one (n, d_out) plane.

    x0_ref/x1_ref: (1,1,Hpad,Wpad) bf16 padded input planes at depths d, d+1
                   (two overlapping views of the same HBM array).
    b_ref:  (4*Wpad, Wo*C1) bf16 banded conv weight, BN scale folded in.
    shift_ref: (1, Wo*C1) f32 BN shift tiled over Wo.
    o_ref:  (1,1,Ho, Wo*C1) bf16 -- lane-dense channels-last y1 plane.
    """
    ho = o_ref.shape[2]
    p0 = x0_ref[0, 0]
    p1 = x1_ref[0, 0]
    # columns ordered (kd, kh) to match the banded weight row order
    acat = jnp.concatenate(
        [p0[0:ho, :], p0[1:ho + 1, :], p1[0:ho, :], p1[1:ho + 1, :]], axis=-1)
    y = jnp.dot(acat, b_ref[...], preferred_element_type=jnp.float32)
    y = jnp.maximum(y + shift_ref[...], 0.0)
    o_ref[0, 0] = y.astype(o_ref.dtype)


def _conv2_bn_relu_pool_kernel(y0_ref, y1_ref, y2_ref, w_ref, shift_ref,
                               pe_ref, po_ref, o_ref):
    """Conv3d(C1->C2,k=2,s=1,p=1) + folded BN + ReLU + AvgPool3d(2).

    One grid step handles one pooled depth plane and HT pooled output rows.
    y{0,1,2}_ref: (1,1,Hpad,Wpad,C1) bf16 padded y1 planes at depths
                  2*dp, 2*dp+1, 2*dp+2 (overlapping views of the same array;
                  index maps don't depend on the row axis so they stay
                  VMEM-resident across the inner row-tile loop).
    w_ref:     (8*C1, C2) bf16 im2col conv weight, BN scale folded in.
    shift_ref: (1, C2) f32 BN shift.
    pe_ref/po_ref: (Wpq, W2) f32 0/1 width-pooling matrices (even/odd pooled
                   columns) -- their results are concatenated along lanes so
                   the store is 2*C2 = 128 lanes wide.
    o_ref:     (1,1,HT,Wpq,2*C2) f32.
    """
    ht = o_ref.shape[2]
    k2 = w_ref.shape[0]
    w2 = pe_ref.shape[1]                    # conv2 output width
    h0 = 2 * ht * pl.program_id(2)          # first conv2 output row of the tile
    nrow = 2 * ht + 1
    planes = (y0_ref, y1_ref, y2_ref)
    # contiguous slab of the padded rows needed by this tile
    slabs = [p[0, 0, pl.ds(h0, nrow), :, :] for p in planes]   # (nrow, Wpad, C1)

    blocks = []
    for pd in range(2):                     # depth position inside pool window
        taps = []
        for kd in range(2):                 # conv taps, order matches w_ref rows
            sl = slabs[pd + kd]
            for kh in range(2):
                for kw in range(2):
                    taps.append(sl[kh:kh + 2 * ht, kw:kw + w2, :])
        cols = jnp.concatenate(taps, axis=-1)            # (2*HT, W2, 8*C1)
        blocks.append(cols.reshape(2 * ht * w2, k2))
    big = jnp.concatenate(blocks, axis=0)                # (4*HT*W2, 8*C1)

    # single fused bf16 matmul, f32 accumulation; epilogue = shift + ReLU
    z = jnp.dot(big, w_ref[...], preferred_element_type=jnp.float32)
    z = jnp.maximum(z + shift_ref[...], 0.0)
    half = 2 * ht * w2
    s = z[:half] + z[half:]                              # pool over depth pair

    rows = []
    for t in range(ht):                                  # pool over row pairs
        sr = (s[(2 * t) * w2:(2 * t + 1) * w2]
              + s[(2 * t + 1) * w2:(2 * t + 2) * w2])    # (W2, C2)
        pe = jnp.dot(pe_ref[...], sr, preferred_element_type=jnp.float32)
        po = jnp.dot(po_ref[...], sr, preferred_element_type=jnp.float32)
        rows.append(jnp.concatenate([pe, po], axis=-1)[None])   # (1, Wpq, 2*C2)
    out = jnp.concatenate(rows, axis=0) * 0.125          # mean over 2x2x2 window
    o_ref[0, 0] = out.astype(o_ref.dtype)


# ---------------------------------------------------------------------------
# Plain-JAX glue: BN folding, banded conv1 weight, pooling matrices
# ---------------------------------------------------------------------------
def _fold_bn(gamma, beta, mean, var, eps=1e-5):
    scale = gamma / jnp.sqrt(var + eps)
    shift = beta - mean * scale
    return scale.astype(jnp.float32), shift.astype(jnp.float32)


def _banded_conv1_weight(w1, scale1, wo, wpad):
    """(C1,1,2,2,2) torch weight -> (4*Wpad, Wo*C1) banded matrix (BN scale folded).

    Row index = (kd*2 + kh) * Wpad + w_padded ; column index = w_out*C1 + c.
    """
    c1 = w1.shape[0]
    b = jnp.zeros((2, 2, wpad, wo, c1), jnp.float32)
    w_idx = jnp.arange(wo)
    for kd in range(2):
        for kh in range(2):
            for kw in range(2):
                vals = jnp.broadcast_to(
                    (w1[:, 0, kd, kh, kw] * scale1)[None, :], (wo, c1))
                b = b.at[kd, kh, w_idx + kw, w_idx, :].set(vals)
    return b.reshape(4 * wpad, wo * c1)


def _pool_mats(w2, wpq):
    """0/1 matrices: pe pools even output columns, po pools odd ones."""
    cols = jnp.arange(w2)[None, :]
    rows = jnp.arange(wpq)[:, None]
    pe = ((cols // 2) == 2 * rows).astype(jnp.float32)
    po = ((cols // 2) == 2 * rows + 1).astype(jnp.float32)
    return pe, po


# ---------------------------------------------------------------------------
# Full UNet3DBlock forward (Pallas path)
# ---------------------------------------------------------------------------
def unet3d_block_forward(x_ncdhw, params, ht_max=8):
    w1, w2 = params["w1"], params["w2"]
    c1, c2 = w1.shape[0], w2.shape[0]
    n, cin, d, h, w = x_ncdhw.shape
    assert cin == 1, "UNet3DBlock default has in_channels == 1"

    s1, b1 = _fold_bn(params["g1"], params["be1"], params["m1"], params["v1"])
    s2, b2 = _fold_bn(params["g2"], params["be2"], params["m2"], params["v2"])

    # -------- stage 1: conv3d1 + bn3d1 + relu1 (banded-matmul kernel) --------
    od1, oh1, ow1 = d + 1, h + 1, w + 1           # conv1 output spatial
    dpad0, hpad0, wpad0 = d + 2, h + 2, w + 2
    wc = ow1 * c1
    xpad = jnp.pad(x_ncdhw[:, 0],
                   ((0, 0), (1, 1), (1, 1), (1, 1))).astype(jnp.bfloat16)
    bflat = _banded_conv1_weight(w1, s1, ow1, wpad0).astype(jnp.bfloat16)
    shift1 = jnp.tile(b1, (ow1,)).reshape(1, wc)

    y1 = pl.pallas_call(
        _conv1_bn_relu_kernel,
        out_shape=jax.ShapeDtypeStruct((n, od1, oh1, wc), jnp.bfloat16),
        grid=(n, od1),
        in_specs=[
            pl.BlockSpec((1, 1, hpad0, wpad0), lambda i, j: (i, j, 0, 0)),
            pl.BlockSpec((1, 1, hpad0, wpad0), lambda i, j: (i, j + 1, 0, 0)),
            pl.BlockSpec((4 * wpad0, wc), lambda i, j: (0, 0)),
            pl.BlockSpec((1, wc), lambda i, j: (0, 0)),
        ],
        out_specs=pl.BlockSpec((1, 1, oh1, wc), lambda i, j: (i, j, 0, 0)),
        compiler_params=pltpu.CompilerParams(
            dimension_semantics=("parallel", "parallel"),
            vmem_limit_bytes=48 * 1024 * 1024),   # well under v7x's 64 MiB
    )(xpad, xpad, bflat, shift1)

    # -------- stage 2: conv3d2 + bn3d2 + relu2 + AvgPool3d(2) ----------------
    od2, oh2, ow2 = od1 + 1, oh1 + 1, ow1 + 1     # conv2 output spatial
    dpo, hpo, wpo = od2 // 2, oh2 // 2, ow2 // 2  # pooled output (floor = torch)
    wpq = (wpo + 1) // 2                          # pooled cols folded in pairs
    hpad1, wpad1 = oh1 + 2, ow1 + 2

    y1_ndhwc = y1.reshape(n, od1, oh1, ow1, c1)   # free reinterpretation
    y1pad = jnp.pad(y1_ndhwc, ((0, 0), (1, 1), (1, 1), (1, 1), (0, 0)))

    w2col = (jnp.transpose(w2, (2, 3, 4, 1, 0)).reshape(8 * c1, c2)
             * s2[None, :]).astype(jnp.bfloat16)
    shift2 = b2.reshape(1, c2)
    pe, po = _pool_mats(ow2, wpq)

    # row-tile size: largest divisor of Hp not exceeding ht_max
    ht = max(t for t in range(1, hpo + 1) if hpo % t == 0 and t <= ht_max)

    out = pl.pallas_call(
        _conv2_bn_relu_pool_kernel,
        out_shape=jax.ShapeDtypeStruct((n, dpo, hpo, wpq, 2 * c2), jnp.float32),
        grid=(n, dpo, hpo // ht),
        in_specs=[
            pl.BlockSpec((1, 1, hpad1, wpad1, c1),
                         lambda i, j, k: (i, 2 * j, 0, 0, 0)),
            pl.BlockSpec((1, 1, hpad1, wpad1, c1),
                         lambda i, j, k: (i, 2 * j + 1, 0, 0, 0)),
            pl.BlockSpec((1, 1, hpad1, wpad1, c1),
                         lambda i, j, k: (i, 2 * j + 2, 0, 0, 0)),
            pl.BlockSpec((8 * c1, c2), lambda i, j, k: (0, 0)),
            pl.BlockSpec((1, c2), lambda i, j, k: (0, 0)),
            pl.BlockSpec((wpq, ow2), lambda i, j, k: (0, 0)),
            pl.BlockSpec((wpq, ow2), lambda i, j, k: (0, 0)),
        ],
        out_specs=pl.BlockSpec((1, 1, ht, wpq, 2 * c2),
                               lambda i, j, k: (i, j, k, 0, 0)),
        compiler_params=pltpu.CompilerParams(
            dimension_semantics=("parallel", "parallel", "arbitrary"),
            vmem_limit_bytes=48 * 1024 * 1024),
    )(y1pad, y1pad, y1pad, w2col, shift2, pe, po)

    # (N, Dp, Hp, Wpq, 2*C2) -> (N, Dp, Hp, Wp, C2) -> NCDHW
    out = out.reshape(n, dpo, hpo, 2 * wpq, c2)[:, :, :, :wpo, :]
    return jnp.transpose(out, (0, 4, 1, 2, 3))


# ---------------------------------------------------------------------------
# Pure-JAX reference (for correctness check)
# ---------------------------------------------------------------------------
def reference_forward(x_ncdhw, params):
    def conv3d(x_ndhwc, w_oidhw):
        rhs = jnp.transpose(w_oidhw, (2, 3, 4, 1, 0))  # DHWIO
        dn = lax.conv_dimension_numbers(x_ndhwc.shape, rhs.shape,
                                        ("NDHWC", "DHWIO", "NDHWC"))
        return lax.conv_general_dilated(
            x_ndhwc, rhs, window_strides=(1, 1, 1), padding=[(1, 1)] * 3,
            dimension_numbers=dn, precision=lax.Precision.HIGHEST)

    s1, b1 = _fold_bn(params["g1"], params["be1"], params["m1"], params["v1"])
    s2, b2 = _fold_bn(params["g2"], params["be2"], params["m2"], params["v2"])

    x = jnp.transpose(x_ncdhw, (0, 2, 3, 4, 1)).astype(jnp.float32)
    y = jnp.maximum(conv3d(x, params["w1"]) * s1 + b1, 0.0)
    y = jnp.maximum(conv3d(y, params["w2"]) * s2 + b2, 0.0)
    nn_, dd, hh, ww, cc = y.shape
    dp, hp, wp = dd // 2, hh // 2, ww // 2
    y = y[:, :2 * dp, :2 * hp, :2 * wp, :]
    y = y.reshape(nn_, dp, 2, hp, 2, wp, 2, cc).mean(axis=(2, 4, 6))
    return jnp.transpose(y, (0, 4, 1, 2, 3))


# ---------------------------------------------------------------------------
if __name__ == "__main__":
    key = jax.random.PRNGKey(0)
    ks = jax.random.split(key, 11)

    # Small shapes consistent with the module defaults: chans=[1, 32, 64]
    N, Cin, D, H, W = 2, 1, 8, 8, 8
    C1, C2 = 32, 64

    x = jax.random.normal(ks[0], (N, Cin, D, H, W), jnp.float32)
    params = dict(
        # conv weights in PyTorch layout (Cout, Cin, kD, kH, kW), bias=False
        w1=jax.random.normal(ks[1], (C1, Cin, 2, 2, 2), jnp.float32) / (Cin * 8) ** 0.5,
        w2=jax.random.normal(ks[2], (C2, C1, 2, 2, 2), jnp.float32) / (C1 * 8) ** 0.5,
        # BatchNorm3d parameters / running stats (eval mode)
        g1=1.0 + 0.1 * jax.random.normal(ks[3], (C1,), jnp.float32),
        be1=0.1 * jax.random.normal(ks[4], (C1,), jnp.float32),
        m1=0.1 * jax.random.normal(ks[5], (C1,), jnp.float32),
        v1=0.5 + jnp.abs(jax.random.normal(ks[6], (C1,), jnp.float32)),
        g2=1.0 + 0.1 * jax.random.normal(ks[7], (C2,), jnp.float32),
        be2=0.1 * jax.random.normal(ks[8], (C2,), jnp.float32),
        m2=0.1 * jax.random.normal(ks[9], (C2,), jnp.float32),
        v2=0.5 + jnp.abs(jax.random.normal(ks[10], (C2,), jnp.float32)),
    )

    out = jax.block_until_ready(unet3d_block_forward(x, params))
    ref = jax.block_until_ready(reference_forward(x, params))

    expected_shape = (N, C2, (D + 2) // 2, (H + 2) // 2, (W + 2) // 2)
    assert out.shape == expected_shape, (out.shape, expected_shape)
    max_err = float(jnp.max(jnp.abs(out - ref)))
    # bf16 MXU operands + bf16 y1 storage (per perf review) vs f32 HIGHEST ref
    assert max_err < 5e-2, f"max abs err {max_err}"

    print("KERNEL_OK")
</pallas_src>

<mosaic_0001>
module attributes {stable_mosaic.version = 11 : i64} {
  func.func @_conv1_bn_relu_kernel(%arg0: i32, %arg1: i32, %arg2: memref<1x1x10x10xbf16, #tpu.memory_space<vmem>>, %arg3: memref<1x1x10x10xbf16, #tpu.memory_space<vmem>>, %arg4: memref<40x288xbf16, #tpu.memory_space<vmem>>, %arg5: memref<1x288xf32, #tpu.memory_space<vmem>>, %arg6: memref<1x1x9x288xbf16, #tpu.memory_space<vmem>>) attributes {dimension_semantics = [#tpu.dimension_semantics<parallel>, #tpu.dimension_semantics<parallel>], iteration_bounds = array<i64: 2, 9>, scalar_prefetch = 0 : i64, scratch_operands = 0 : i64, tpu.core_type = #tpu.core_type<tc>, window_params = [{transform_indices = @transform_0, window_bounds = array<i64: 1, 1, 10, 10>}, {transform_indices = @transform_1, window_bounds = array<i64: 1, 1, 10, 10>}, {pipeline_mode = #tpu.pipeline_mode<synchronous>, transform_indices = @transform_2, window_bounds = array<i64: 40, 288>}, {pipeline_mode = #tpu.pipeline_mode<synchronous>, transform_indices = @transform_3, window_bounds = array<i64: 1, 288>}, {transform_indices = @transform_4, window_bounds = array<i64: 1, 1, 9, 288>}]} {
    %c0 = arith.constant 0 : index
    %c0_0 = arith.constant 0 : index
    %c0_1 = arith.constant 0 : index
    %c0_2 = arith.constant 0 : index
    %0 = vector.load %arg2[%c0, %c0_0, %c0_1, %c0_2] : memref<1x1x10x10xbf16, #tpu.memory_space<vmem>>, vector<1x1x10x10xbf16>
    %1 = vector.shape_cast %0 : vector<1x1x10x10xbf16> to vector<10x10xbf16>
    %c0_3 = arith.constant 0 : index
    %c0_4 = arith.constant 0 : index
    %c0_5 = arith.constant 0 : index
    %c0_6 = arith.constant 0 : index
    %2 = vector.load %arg3[%c0_3, %c0_4, %c0_5, %c0_6] : memref<1x1x10x10xbf16, #tpu.memory_space<vmem>>, vector<1x1x10x10xbf16>
    %3 = vector.shape_cast %2 : vector<1x1x10x10xbf16> to vector<10x10xbf16>
    %4 = vector.extract_strided_slice %1 {offsets = [0, 0], sizes = [9, 10], strides = [1, 1]} : vector<10x10xbf16> to vector<9x10xbf16>
    %5 = vector.extract_strided_slice %1 {offsets = [1, 0], sizes = [9, 10], strides = [1, 1]} : vector<10x10xbf16> to vector<9x10xbf16>
    %6 = vector.extract_strided_slice %3 {offsets = [0, 0], sizes = [9, 10], strides = [1, 1]} : vector<10x10xbf16> to vector<9x10xbf16>
    %7 = vector.extract_strided_slice %3 {offsets = [1, 0], sizes = [9, 10], strides = [1, 1]} : vector<10x10xbf16> to vector<9x10xbf16>
    %8 = tpu.concatenate %4, %5, %6, %7 in 1 : vector<9x10xbf16>, vector<9x10xbf16>, vector<9x10xbf16>, vector<9x10xbf16> -> vector<9x40xbf16>
    %c0_7 = arith.constant 0 : index
    %c0_8 = arith.constant 0 : index
    %9 = vector.load %arg4[%c0_7, %c0_8] : memref<40x288xbf16, #tpu.memory_space<vmem>>, vector<40x288xbf16>
    %cst = arith.constant dense<0.000000e+00> : vector<9x288xf32>
    %10 = tpu.matmul %8, %9, %cst {dimension_numbers = #tpu.dot_dimension_numbers<[1], [0], [0], [1], [0, 0, 1, 1], [], []>} : vector<9x40xbf16>, vector<40x288xbf16>, vector<9x288xf32> -> vector<9x288xf32>
    %c0_9 = arith.constant 0 : index
    %c0_10 = arith.constant 0 : index
    %11 = vector.load %arg5[%c0_9, %c0_10] : memref<1x288xf32, #tpu.memory_space<vmem>>, vector<1x288xf32>
    %12 = vector.broadcast %11 : vector<1x288xf32> to vector<9x288xf32>
    %13 = arith.addf %10, %12 : vector<9x288xf32>
    %cst_11 = arith.constant 0.000000e+00 : f32
    %14 = vector.broadcast %cst_11 : f32 to vector<9x288xf32>
    %15 = arith.maximumf %13, %14 : vector<9x288xf32>
    %16 = arith.truncf %15 : vector<9x288xf32> to vector<9x288xbf16>
    %c0_12 = arith.constant 0 : index
    %c0_13 = arith.constant 0 : index
    %c0_14 = arith.constant 0 : index
    %c0_15 = arith.constant 0 : index
    %17 = vector.load %arg6[%c0_12, %c0_13, %c0_14, %c0_15] : memref<1x1x9x288xbf16, #tpu.memory_space<vmem>>, vector<1x1x9x288xbf16>
    %18 = vector.shape_cast %17 : vector<1x1x9x288xbf16> to vector<9x288xbf16>
    %19 = vector.shape_cast %16 : vector<9x288xbf16> to vector<1x1x9x288xbf16>
    tpu.vector_store %arg6[%c0_12, %c0_13, %c0_14, %c0_15], %19 {strides = array<i32>} : memref<1x1x9x288xbf16, #tpu.memory_space<vmem>>, vector<1x1x9x288xbf16>,
    return
  }
  func.func @transform_0(%arg0: i32, %arg1: i32) -> (i32, i32, i32, i32) {
    %c0_i32 = arith.constant 0 : i32
    %c0_i32_0 = arith.constant 0 : i32
    %c0_i32_1 = arith.constant 0 : i32
    return %arg0, %arg1, %c0_i32, %c0_i32_0 : i32, i32, i32, i32
  }
  func.func @transform_1(%arg0: i32, %arg1: i32) -> (i32, i32, i32, i32) {
    %c1_i32 = arith.constant 1 : i32
    %0 = arith.addi %arg1, %c1_i32 : i32
    %c0_i32 = arith.constant 0 : i32
    %c0_i32_0 = arith.constant 0 : i32
    %c0_i32_1 = arith.constant 0 : i32
    return %arg0, %0, %c0_i32, %c0_i32_0 : i32, i32, i32, i32
  }
  func.func @transform_2(%arg0: i32, %arg1: i32) -> (i32, i32) {
    %c0_i32 = arith.constant 0 : i32
    %c0_i32_0 = arith.constant 0 : i32
    %c0_i32_1 = arith.constant 0 : i32
    return %c0_i32, %c0_i32_0 : i32, i32
  }
  func.func @transform_3(%arg0: i32, %arg1: i32) -> (i32, i32) {
    %c0_i32 = arith.constant 0 : i32
    %c0_i32_0 = arith.constant 0 : i32
    %c0_i32_1 = arith.constant 0 : i32
    return %c0_i32, %c0_i32_0 : i32, i32
  }
  func.func @transform_4(%arg0: i32, %arg1: i32) -> (i32, i32, i32, i32) {
    %c0_i32 = arith.constant 0 : i32
    %c0_i32_0 = arith.constant 0 : i32
    %c0_i32_1 = arith.constant 0 : i32
    return %arg0, %arg1, %c0_i32, %c0_i32_0 : i32, i32, i32, i32
  }
}

</mosaic_0001>

<bundles_post_ra>
// kernel: tpu_custom_call.1
= control target key start
LH: loop header
LB: loop body
LE: loop exit
PB: predicated region body
PF: predicated region fallthrough
CT: control target
= control target key end

     0   :  { %s824_s15 = smov 0   ;;  %s826_s16 = smov 0   ;;  %s942_s0 = inlined_call_operand.vmem [shape: bf16[2,10,10,10], index: 0, kind: input, shape index: {}]   ;;  %s943_s1 = inlined_call_operand.vmem [shape: bf16[2,10,10,10], index: 1, kind: input, shape index: {}]   ;;  %s944_s2 = inlined_call_operand.vmem [shape: bf16[40,288], index: 2, kind: input, shape index: {}]   ;;  %s945_s3 = inlined_call_operand.vmem [shape: f32[1,288], index: 3, kind: input, shape index: {}]   ;;  %s946_s4 = inlined_call_operand.vmem [shape: bf16[2,9,9,288], index: 4, kind: output, shape index: {}]  }
   0x1   :  { %s828_s17 = smov 0   ;;  %s830_s18 = smov 0  }
   0x2   :  { %s832_s19 = smov 0  }
   0x3 LB: > { %s23_s20 = sadd.s32 1, %s783_s17  ;;  %s26_s21 = sadd.s32 1, %s787_s18  ;;  %s791_s19 = sphi %s832_s19, %s14_s19   ;;  %s787_s18 = sphi %s830_s18, %s954_s18   ;;  %s783_s17 = sphi %s828_s17, %s953_s17   ;;  %s779_s16 = sphi %s826_s16, %s952_s16   ;;  %s775_s15 = sphi %s824_s15, %s951_s15  }
   0x4   : > { %p24_p0 = scmp.ge.s32.totalorder %s23_s20, 9  ;;  %p647_p1 = scmp.ge.s32.totalorder %s791_s19, 1 }
   0x5   : > { %p202_p2 = scmp.lt.s32.totalorder %s791_s19, 19 }
   0x6   : > { %s956_s20 = smov (%p24_p0, %s23_s20), 0  ;;  %s958_s21 = smov (!%p24_p0, %s26_s21), %s787_s18 }
   0x7   : > { %p203_p3 = pnand %p647_p1, %p202_p2  ;;  %p28_p4 = scmp.ge.s32.totalorder %s958_s21, 2 }
   0x8   : > { %p246_p5 = scmp.lt.s32.totalorder (!%p203_p3), %s779_s16, 1  ;;  %p248_p6 = scmp.lt.s32.totalorder (!%p203_p3), %s775_s15, 9  ;;  %v742_v0 = vld [vmem:[%s944_s2 + $0x4] ss:$12 sps:$4 sm:$0xff] (!%p203_p3)   ;;  %v744_v1 = vld [vmem:[%s944_s2] ss:$12 sps:$4 sm:$0xff] (!%p203_p3)   ;;  %v331_v30 = vlaneseq (!%p203_p3) }
   0x9   : > { %s960_s21 = smov (%p28_p4, %s958_s21), 0  ;;  %206 = sbr.rel (%p203_p3) target bundleno = 374 (0x176), region = 36 }
   0xa   : > { %s255_s24 = sadd.s32 (!%p203_p3), 1, %s775_s15  ;;  %399 = vmatprep.subr.bf16.mxu0 (!%p203_p3), %v742_v0  ;;  %v793_v2 = vmov (!%p203_p3), 0.0   ;;  %v745_v3 = vld [vmem:[%s944_s2 + $0x8] ss:$12 sps:$4 sm:$0xff] (!%p203_p3)   ;;  %v748_v5 = vld [vmem:[%s944_s2 + $0x18] ss:$12 sps:$4 sm:$0xff] (!%p203_p3)  }
   0xb   : > { %681 = vmatprep.subr.bf16.mxu1 (!%p203_p3), %v793_v2  ;;  %400 = vmatpush1.bf16.msra.mxu0 (!%p203_p3), %v744_v1  ;;  %v746_v4 = vld [vmem:[%s944_s2 + $0x1c] ss:$12 sps:$4 sm:$0xff] (!%p203_p3)   ;;  %v749_v6 = vld [vmem:[%s944_s2 + $0x20] ss:$12 sps:$4 sm:$0xff] (!%p203_p3)   ;;  %p258_p7 = scmp.lt.s32.totalorder (!%p203_p3), %s255_s24, 9  ;;  %v327_v7 = vld [vmem:[%s944_s2 + $0x30] sm:$0xff] (!%p203_p3) }
   0xc   : > { %682 = vmatpush3.bf16.msra.mxu1 (!%p203_p3), %v745_v3  ;;  %401 = vmatprep.subr.bf16.mxu0 (!%p203_p3), %v746_v4  ;;  %vm389_vm0 = vcmask (!%p203_p3), 1043456   ;;  %v662_v8 = vcombine.high (!%p203_p3), %v327_v7, %v327_v7  ;;  %v661_v9 = vcombine.low (!%p203_p3), %v327_v7, %v327_v7  ;;  %v752_v10 = vld [vmem:[%s944_s2 + $0x38] ss:$0 sps:$4 sm:$0xff] (!%p203_p3)   ;;  %v794_v16 = vmov (!%p203_p3), 0   ;;  %s796_s10 = smov (!%p203_p3), 10   ;;  %s797_s11 = smov (!%p203_p3), 20  }
   0xd   : > { %683 = vmatprep.subr.bf16.mxu1 (!%p203_p3), %v793_v2  ;;  %v397_v13 = vsel (!%p203_p3), %vm389_vm0, %v752_v10, 0  ;;  %431 = vmatprep.mubr.bf16.mxu0 (!%p203_p3), %v794_v16  ;;  %vm795_vm1 = vmmov (!%p203_p3), 0   ;;  %vm310_vm2 = vcmask (!%p203_p3), 80896   ;;  %vm313_vm3 = vcmask (!%p203_p3), 162816   ;;  %p268_p8 = scmp.lt.s32.totalorder (!%p203_p3), %s775_s15, 8 }
   0xe   : > { %v391_v12 = vsel (!%p203_p3), %vm389_vm0, %v661_v9, 0  ;;  %687 = vmatprep.mubr.msk.bf16.mxu1 (!%p203_p3), %vm795_vm1, %v793_v2  ;;  %vm316_vm4 = vcmask (!%p203_p3), 244736   ;;  %vm386_vm5 = vcmask (!%p203_p3), 326656   ;;  %v332_v31 = vshrl.u32 (!%p203_p3), %v331_v30, 7  ;;  %v329_v34 = vld [vmem:[%s945_s3] sm:$0x7] (!%p203_p3) }
   0xf   : > { %402 = vmatpush1.bf16.msra.mxu0 (!%p203_p3), %v748_v5  ;;  %vm512_vm6 = vcmask (!%p203_p3), 1040384   ;;  %vm513_vm7 = vsmask.f32 (!%p203_p3), 256  ;;  %vm515_vm8 = vcmask (!%p203_p3), 1044484   ;;  %vm516_vm9 = vsmask.f32 (!%p203_p3), 4352 }
  0x10   : > { %s962_s16 = smov (!%p246_p5, %s779_s16), 1  ;;  %684 = vmatpush3.bf16.msra.mxu1 %v749_v6  ;;  %664 = vmatprep.subr.msk.bf16.mxu0 %vm389_vm0, %v662_v8  ;;  %s964_s24 = smov (!%p258_p7, %s255_s24), 9  ;;  %v333_v32 = vsub.s32 0, %v332_v31  ;;  %v341_v33 = vsub.s32 2, %v332_v31  ;;  %v337_v35 = vsub.s32 1, %v332_v31  ;;  %vm522_vm10 = vcmask 253952   ;;  %vm911_vm11 = vmand %vm512_vm6, %vm513_vm7 }
  0x11   : > { %s249_s27 = scalar_select %p248_p6, %s775_s15, 9  ;;  %685 = vmatprep.subr.bf16.mxu1 %v793_v2  ;;  %vm510_vm12 = vcmask 257024   ;;  %vm917_vm13 = vmand %vm515_vm8, %vm516_vm9 }
  0x12   : > { %s691_s6 = smul.u32 20, %s962_s16  ;;  %s650_s29 = sshll.u32 %s964_s24, 1  ;;  %v334_v36 = vrot.slane %v329_v34, %v333_v32  ;;  %v342_v37 = vrot.slane %v329_v34, %v341_v33  ;;  %v338_v38 = vrot.slane %v329_v34, %v337_v35  ;;  %vm523_vm14 = vmand %vm522_vm10, %vm513_vm7 }
  0x13   : > { %s648_s9 = sshll.u32 %s249_s27, 1  ;;  %404 = vmatpush1.bf16.msra.mxu0 %v391_v12  ;;  %s798_s24 = smov 30   ;;  %vm518_vm15 = vmor %vm917_vm13, %vm911_vm11 }
  0x14   : > { %s252_s12 = sadd.s32 %s691_s6, %s648_s9  ;;  %s262_s30 = sadd.s32 %s691_s6, %s650_s29  ;;  %686 = vmatpush3.bf16.msra.mxu1 %v397_v13 }
  0x15   : > { %s649_s22 = sshll.u32 %s252_s12, 2  ;;  %s651_s5 = sshll.u32 %s262_s30, 2 }
  0x16   : > { %s254_s28 = scalar_lea.vmem %s942_s0, %s649_s22  ;;  %s264_s9 = scalar_lea.vmem %s943_s1, %s651_s5 }
  0x17   : > { %v740_v11 = vld [vmem:[%s254_s28] sm:$0x1f]   ;;  %s966_s15 = smov (!%p268_p8, %s775_s15), 8  ;;  %s693_s6 = smul.u32 54, %s962_s16 }
  0x18   : > { %v286_v14 = vshrl.u32 %v740_v11, 16  ;;  %v288_v15 = vshll.u32 %v740_v11, 16  ;;  %v741_v19 = vld [vmem:[%s264_s9] sm:$0x1f]   ;;  %s692_s12 = smul.u32 6, %s966_s15 }
  0x19   : > { %v302_v20 = vshrl.u32 %v741_v19, 16  ;;  %v304_v21 = vshll.u32 %v741_v19, 16 }
  0x1a   : > { %v290_v17 = vrot.slane %v288_v15, 1  ;;  %s272_s22 = sadd.s32 %s693_s6, %s692_s12 }
  0x1b   : > { %v306_v22 = vrot.slane %v304_v21, 1  ;;  %s652_s23 = sshll.u32 %s272_s22, 2 }
  0x1c   : > { %v291_v18 = vor.u32 %v290_v17, %v286_v14  ;;  %s274_s25 = scalar_lea.vmem %s946_s4, %s652_s23 }
  0x1d   : > { %v307_v23 = vor.u32 %v306_v22, %v302_v20  ;;  %v524_v62 = vld [vmem:[%s274_s25 + $0x14] sm:$0x1]  ;;  %v519_v1 = vld [vmem:[%s274_s25 + $0xc] sm:$0x11] }
  0x1e   : > { %292 = vrot.lane.b32.xlu0 %v291_v18, %s796_s10 }
  0x1f   : > { %308 = vrot.lane.b32.xlu1 %v307_v23, %s798_s24 }
  0x22   : > { %299 = vrot.lane.b32.xlu0 %v741_v19, %s797_s11 }
  0x90   : > { %v293_v24 = vpop.permute.xlu0 %292 }
  0x91   : > { %v312_v25 = vsel %vm310_vm2, %v740_v11, %v293_v24  ;;  %v309_v28 = vpop.permute.xlu1 %308 }
  0x94   : > { %v300_v26 = vpop.permute.xlu0 %299 }
  0x95   : > { %v315_v27 = vsel %vm313_vm3, %v312_v25, %v300_v26 }
  0x96   : > { %v318_v29 = vsel %vm316_vm4, %v315_v27, %v309_v28 }
  0x97   : > { %665 = vmatmul.mubr.msk.bf16.vlgmr.msra.gmra.mrb[0].mxu0 %vm386_vm5, %v318_v29  ;;  %688 = vmatmul.mubr.msk.bf16.vlgmr.msra.gmra.mrb[0].mxu1 %vm386_vm5, %v318_v29 }
 0x16a   : > { %v433_v39 = vpop.f32.mrb[0].mxu0  ;;  %v476_v40 = vpop.f32.mrb[0].mxu1 }
 0x16b   : > { %v434_v41 = vadd.f32 %v433_v39, %v334_v36  ;;  %v477_v42 = vadd.f32 %v476_v40, %v342_v37  ;;  %v435_v43 = vpop.f32.mrb[1].mxu0  ;;  %v689_v44 = vpop.f32.mrb[1].mxu1 }
 0x16c   : > { %v436_v45 = vadd.f32 %v435_v43, %v338_v38  ;;  %v437_v46 = vpop.f32.mrb[2].mxu0  ;;  %v479_v47 = vpop.f32.mrb[2].mxu1 }
 0x16d   : > { %v483_v48 = vmax.f32 %v434_v41, 0.0  ;;  %v485_v49 = vmax.f32 %v477_v42, 0.0  ;;  %v438_v50 = vadd.f32 %v437_v46, %v334_v36  ;;  %v480_v51 = vadd.f32 %v479_v47, %v342_v37  ;;  %v439_v53 = vpop.f32.mrb[3].mxu0  ;;  %v690_v54 = vpop.f32.mrb[3].mxu1 }
 0x16e   : > { %v484_v55 = vmax.f32 %v436_v45, 0.0  ;;  %v440_v56 = vadd.f32 %v439_v53, %v338_v38 }
 0x16f   : > { %v674_v58 = vpack.c.bf16 %v485_v49, %v485_v49  ;;  %v486_v59 = vmax.f32 %v438_v50, 0.0  ;;  %v488_v60 = vmax.f32 %v480_v51, 0.0 }
 0x170   : > { %v673_v61 = vpack.c.bf16 %v484_v55, %v483_v48  ;;  %v487_v63 = vmax.f32 %v440_v56, 0.0 }
 0x171   : > { %511 = vst.msk [vmem:[%s274_s25 + $0x8] sm:$0xf] %vm510_vm12, %v674_v58  ;;  %v676_v0 = vpack.c.bf16 %v488_v60, %v488_v60 }
 0x172   : > { %509 = vst [vmem:[%s274_s25] sm:$0xff] %v673_v61  ;;  %v675_v2 = vpack.c.bf16 %v487_v63, %v486_v59 }
 0x173   : > { %v525_v3 = vsel %vm523_vm14, %v676_v0, %v524_v62 }
 0x174   : > { %526 = vst [vmem:[%s274_s25 + $0x14] sm:$0x1] %v525_v3  ;;  %v520_v4 = vsel %vm518_vm15, %v675_v2, %v519_v1 }
 0x175   : > { %521 = vst [vmem:[%s274_s25 + $0xc] sm:$0x11] %v520_v4 }
 0x176 PF: > { %s14_s19 = sadd.s32 1, %s791_s19   ;;  %s951_s15 = smov %s783_s17 }
 0x177   : > { %p11_p9 = scmp.ge.s32.totalorder %s14_s19, 20   ;;  %s952_s16 = smov %s787_s18 }
 0x178   : > { %s953_s17 = smov %s956_s20  ;;  %s954_s18 = smov %s960_s21 }
 0x179   :  { %13 = sbr.rel (!%p11_p9) target bundleno = 3 (0x3), region = 69 }

</bundles_post_ra>
